<compile_context>
chip_gen: v5e
topology: v5e:2x2
jax: 0.10.0
libtpu: 0.0.40
codegen_flags: <defaults>
</compile_context>

<pallas_src>
from functools import partial

import jax
import jax.numpy as jnp
from jax.experimental import pallas as pl
from jax.experimental.pallas import tpu as pltpu


def _vq_kernel(z_ref, w_ref, emb_ref, half_embsq_ref, zq_ref, dist_ref, ind_ref, *,
               bf16_cross=False):
    # One (batch, time-tile) per grid step.
    z = z_ref[0]                     # (C, TN)
    w = w_ref[...]                   # (Q, C)
    emb = emb_ref[...]               # (K, Q)
    half_emb_sq = half_embsq_ref[...]  # (K, 1)  -- precomputed ||emb_k||^2 / 2

    # 1x1 Conv1d (bias=False) == channel matmul on the MXU.
    ze = jnp.dot(w, z, preferred_element_type=jnp.float32)              # (Q, TN)

    # Squared L2 distance via the expansion  ||ze||^2 - 2 emb@ze + ||emb||^2.
    # argmin_k dist == argmax_k (emb@ze - ||emb||^2/2); the ||ze||^2 term is constant over K.
    if bf16_cross:
        cross = jnp.dot(emb.astype(jnp.bfloat16), ze.astype(jnp.bfloat16),
                        preferred_element_type=jnp.float32)             # (K, TN)
    else:
        cross = jnp.dot(emb, ze, preferred_element_type=jnp.float32)    # (K, TN)
    score = cross - half_emb_sq                                          # (K, TN)

    # max / argmax over the codebook axis (first-occurrence tie-break like torch.min).
    max_s = jnp.max(score, axis=0, keepdims=True)                        # (1, TN)
    k = score.shape[0]
    iota_k = jax.lax.broadcasted_iota(jnp.int32, score.shape, 0)         # (K, TN)
    is_best = score >= max_s                                             # (K, TN)
    min_ind = jnp.min(jnp.where(is_best, iota_k, jnp.int32(k)),
                      axis=0, keepdims=True)                             # (1, TN)

    # Codebook gather via one-hot matmul (MXU): zq[q, n] = emb[min_ind[n], q].
    onehot = (iota_k == min_ind).astype(jnp.float32)                     # (K, TN)
    zq = jax.lax.dot_general(emb, onehot, (((0,), (0,)), ((), ())),
                             preferred_element_type=jnp.float32)         # (Q, TN)

    # min_dist = ||ze||^2 - 2 * max_score  (added only on the (1, TN) output slab).
    ze_sq = jnp.sum(ze * ze, axis=0, keepdims=True)                      # (1, TN)

    zq_ref[0] = zq.astype(zq_ref.dtype)
    dist_ref[0] = jnp.maximum(ze_sq - 2.0 * max_s, 0.0).astype(dist_ref.dtype)
    ind_ref[0] = min_ind.astype(jnp.int32)


def _pick_tile_n(N, K):
    """Pick a lane-dense time tile so (K, TN) f32 intermediates stay a few MiB each."""
    if N <= 512 or N % 128 != 0:
        return N                      # full-extent block (always a legal BlockSpec)
    slab_budget = 4 * 1024 * 1024     # bytes per (K, TN) f32 intermediate
    tn = (slab_budget // (4 * max(K, 1))) // 128 * 128
    tn = max(128, min(tn, 2048, N))
    while N % tn != 0:                # terminates: N % 128 == 0
        tn -= 128
    return tn


def vq_forward(z, w, emb, *, tile_n=None, use_bf16_cross=False):
    """z: (B, C, N) f32; w: (Q, C) f32; emb: (K, Q) f32."""
    B, C, N = z.shape
    Q, _ = w.shape
    K, _ = emb.shape

    tn = tile_n if tile_n is not None else _pick_tile_n(N, K)
    assert N % tn == 0, "time tile must divide N"
    grid = (B, N // tn)

    # Precompute half codebook squared norms once; resident in VMEM (constant index_map).
    half_emb_sq = (0.5 * jnp.sum(emb * emb, axis=1, keepdims=True)).astype(jnp.float32)  # (K, 1)

    # Rough per-step VMEM budget (double-buffered tiles + resident params + intermediates).
    vmem_est = 4 * (
        2 * (C * tn)                      # z tiles
        + 2 * (Q * tn)                    # zq out tiles
        + 2 * 2 * (2 * tn)                # dist + ind out tiles
        + 2 * (Q * C + K * Q + K)         # w, emb, half_emb_sq (resident)
        + (2 * Q * tn + 5 * K * tn)       # ze, zq, score/iota/onehot intermediates
    )
    vmem_limit = int(min(64 * 1024 * 1024, max(32 * 1024 * 1024, vmem_est)))

    out_shapes = (
        jax.ShapeDtypeStruct((B, Q, N), jnp.float32),   # zq
        jax.ShapeDtypeStruct((B, 1, N), jnp.float32),   # min_dist (squeezed outside)
        jax.ShapeDtypeStruct((B, 1, N), jnp.int32),     # min_ind
    )

    zq, min_dist, min_ind = pl.pallas_call(
        partial(_vq_kernel, bf16_cross=use_bf16_cross),
        out_shape=out_shapes,
        grid_spec=pltpu.PrefetchScalarGridSpec(
            num_scalar_prefetch=0,
            grid=grid,
            in_specs=[
                pl.BlockSpec((1, C, tn), lambda b, n: (b, 0, n)),   # z tile
                pl.BlockSpec((Q, C), lambda b, n: (0, 0)),          # conv weight (resident)
                pl.BlockSpec((K, Q), lambda b, n: (0, 0)),          # codebook (resident)
                pl.BlockSpec((K, 1), lambda b, n: (0, 0)),          # ||emb||^2/2 (resident)
            ],
            out_specs=[
                pl.BlockSpec((1, Q, tn), lambda b, n: (b, 0, n)),
                pl.BlockSpec((1, 1, tn), lambda b, n: (b, 0, n)),
                pl.BlockSpec((1, 1, tn), lambda b, n: (b, 0, n)),
            ],
        ),
        compiler_params=pltpu.CompilerParams(
            dimension_semantics=("parallel", "parallel"),
            vmem_limit_bytes=vmem_limit,
        ),
    )(z, w, emb, half_emb_sq)

    return zq, min_dist[:, 0, :], min_ind[:, 0, :]


def _xavier_uniform(key, shape, fan_in, fan_out, gain=1.0):
    bound = gain * jnp.sqrt(6.0 / (fan_in + fan_out))
    return jax.random.uniform(key, shape, jnp.float32, -bound, bound)


if __name__ == "__main__":
    # Small shapes consistent with the module: B batch, n_in input channels,
    # n_out = Q quant dims, K = vq_n_embed codes, N timesteps.
    B, n_in, n_out, K, N = 2, 4, 8, 16, 16

    key = jax.random.PRNGKey(0)
    k_z, k_w, k_e = jax.random.split(key, 3)

    # Deterministic parameter init (xavier_uniform, gain=1), matching __init__ shapes.
    # Conv1d(n_in, n_out, 1, bias=False): weight (n_out, n_in, 1) -> squeeze kernel dim.
    w = _xavier_uniform(k_w, (n_out, n_in), fan_in=n_in, fan_out=n_out)
    emb = _xavier_uniform(k_e, (K, n_out), fan_in=n_out, fan_out=K)
    z = jax.random.normal(k_z, (B, n_in, N), jnp.float32)

    zq, min_dist, min_ind = vq_forward(z, w, emb)
    jax.block_until_ready((zq, min_dist, min_ind))

    # Pure-JAX reference of the PyTorch forward (exact subtract-square distances).
    ze_ref = jnp.einsum("qc,bcn->bqn", w, z)
    d_ref = jnp.sum((ze_ref[:, None, :, :] - emb[None, :, :, None]) ** 2, axis=2)  # (B,K,N)
    ind_ref = jnp.argmin(d_ref, axis=1).astype(jnp.int32)                           # (B,N)
    dist_ref = jnp.min(d_ref, axis=1)                                               # (B,N)

    # Indices may only differ where the exact distances tie within float tolerance
    # (the MXU expansion drifts in the last bits).
    d_at_kernel_ind = jnp.take_along_axis(d_ref, min_ind[:, None, :], axis=1)[:, 0, :]
    assert bool(jnp.all((min_ind == ind_ref) | (jnp.abs(d_at_kernel_ind - dist_ref) < 1e-4)))
    # Distance at the chosen code matches the exact formula.
    assert jnp.allclose(min_dist, d_at_kernel_ind, atol=1e-4, rtol=1e-4)
    # Quantized output is exactly the codebook row at the chosen index.
    assert jnp.allclose(zq, jnp.transpose(emb[min_ind], (0, 2, 1)), atol=1e-5, rtol=1e-5)
    # And matches the full reference wherever indices agree (they do at these shapes).
    zq_ref = jnp.transpose(emb[ind_ref], (0, 2, 1))
    agree = (min_ind == ind_ref)[:, None, :]
    assert jnp.allclose(jnp.where(agree, zq, 0.0), jnp.where(agree, zq_ref, 0.0),
                        atol=1e-5, rtol=1e-5)

    print("KERNEL_OK")
</pallas_src>

<mosaic_0001>
module attributes {stable_mosaic.version = 11 : i64} {
  func.func @_vq_kernel(%arg0: i32, %arg1: i32, %arg2: memref<1x4x16xf32, #tpu.memory_space<vmem>>, %arg3: memref<8x4xf32, #tpu.memory_space<vmem>>, %arg4: memref<16x8xf32, #tpu.memory_space<vmem>>, %arg5: memref<16x1xf32, #tpu.memory_space<vmem>>, %arg6: memref<1x8x16xf32, #tpu.memory_space<vmem>>, %arg7: memref<1x1x16xf32, #tpu.memory_space<vmem>>, %arg8: memref<1x1x16xi32, #tpu.memory_space<vmem>>) attributes {dimension_semantics = [#tpu.dimension_semantics<parallel>, #tpu.dimension_semantics<parallel>], iteration_bounds = array<i64: 2, 1>, scalar_prefetch = 0 : i64, scratch_operands = 0 : i64, tpu.core_type = #tpu.core_type<tc>, window_params = [{transform_indices = @transform_0, window_bounds = array<i64: 1, 4, 16>}, {pipeline_mode = #tpu.pipeline_mode<synchronous>, transform_indices = @transform_1, window_bounds = array<i64: 8, 4>}, {pipeline_mode = #tpu.pipeline_mode<synchronous>, transform_indices = @transform_2, window_bounds = array<i64: 16, 8>}, {pipeline_mode = #tpu.pipeline_mode<synchronous>, transform_indices = @transform_3, window_bounds = array<i64: 16, 1>}, {transform_indices = @transform_4, window_bounds = array<i64: 1, 8, 16>}, {transform_indices = @transform_5, window_bounds = array<i64: 1, 1, 16>}, {transform_indices = @transform_6, window_bounds = array<i64: 1, 1, 16>}]} {
    %c0 = arith.constant 0 : index
    %c0_0 = arith.constant 0 : index
    %c0_1 = arith.constant 0 : index
    %0 = vector.load %arg2[%c0, %c0_0, %c0_1] : memref<1x4x16xf32, #tpu.memory_space<vmem>>, vector<1x4x16xf32>
    %1 = vector.shape_cast %0 : vector<1x4x16xf32> to vector<4x16xf32>
    %c0_2 = arith.constant 0 : index
    %c0_3 = arith.constant 0 : index
    %2 = vector.load %arg3[%c0_2, %c0_3] : memref<8x4xf32, #tpu.memory_space<vmem>>, vector<8x4xf32>
    %c0_4 = arith.constant 0 : index
    %c0_5 = arith.constant 0 : index
    %3 = vector.load %arg4[%c0_4, %c0_5] : memref<16x8xf32, #tpu.memory_space<vmem>>, vector<16x8xf32>
    %c0_6 = arith.constant 0 : index
    %c0_7 = arith.constant 0 : index
    %4 = vector.load %arg5[%c0_6, %c0_7] : memref<16x1xf32, #tpu.memory_space<vmem>>, vector<16x1xf32>
    %cst = arith.constant dense<0.000000e+00> : vector<8x16xf32>
    %5 = tpu.matmul %2, %1, %cst {dimension_numbers = #tpu.dot_dimension_numbers<[1], [0], [0], [1], [0, 0, 1, 1], [], []>} : vector<8x4xf32>, vector<4x16xf32>, vector<8x16xf32> -> vector<8x16xf32>
    %cst_8 = arith.constant dense<0.000000e+00> : vector<16x16xf32>
    %6 = tpu.matmul %3, %5, %cst_8 {dimension_numbers = #tpu.dot_dimension_numbers<[1], [0], [0], [1], [0, 0, 1, 1], [], []>} : vector<16x8xf32>, vector<8x16xf32>, vector<16x16xf32> -> vector<16x16xf32>
    %7 = vector.broadcast %4 : vector<16x1xf32> to vector<16x16xf32>
    %8 = arith.subf %6, %7 : vector<16x16xf32>
    %cst_9 = arith.constant dense<0xFF800000> : vector<16xf32>
    %9 = vector.multi_reduction <maximumf>, %8, %cst_9 [0] : vector<16x16xf32> to vector<16xf32>
    %10 = vector.shape_cast %9 : vector<16xf32> to vector<1x16xf32>
    %11 = tpu.iota {dimensions = array<i32: 0>} : vector<16x16xi32>
    %12 = vector.broadcast %10 : vector<1x16xf32> to vector<16x16xf32>
    %13 = arith.cmpf oge, %8, %12 : vector<16x16xf32>
    %c16_i32 = arith.constant 16 : i32
    %14 = vector.broadcast %c16_i32 : i32 to vector<16x16xi32>
    %15 = arith.select %13, %11, %14 : vector<16x16xi1>, vector<16x16xi32>
    %cst_10 = arith.constant dense<2147483647> : vector<16xi32>
    %16 = vector.multi_reduction <minsi>, %15, %cst_10 [0] : vector<16x16xi32> to vector<16xi32>
    %17 = vector.shape_cast %16 : vector<16xi32> to vector<1x16xi32>
    %18 = vector.broadcast %17 : vector<1x16xi32> to vector<16x16xi32>
    %19 = arith.cmpi eq, %11, %18 : vector<16x16xi32>
    %20 = arith.extui %19 : vector<16x16xi1> to vector<16x16xi32>
    %21 = arith.sitofp %20 : vector<16x16xi32> to vector<16x16xf32>
    %cst_11 = arith.constant dense<0.000000e+00> : vector<8x16xf32>
    %22 = tpu.matmul %3, %21, %cst_11 {dimension_numbers = #tpu.dot_dimension_numbers<[0], [0], [1], [1], [0, 1, 1, 1], [], []>} : vector<16x8xf32>, vector<16x16xf32>, vector<8x16xf32> -> vector<8x16xf32>
    %23 = arith.mulf %5, %5 : vector<8x16xf32>
    %cst_12 = arith.constant dense<0.000000e+00> : vector<16xf32>
    %24 = vector.multi_reduction <add>, %23, %cst_12 [0] : vector<8x16xf32> to vector<16xf32>
    %25 = vector.shape_cast %24 : vector<16xf32> to vector<1x16xf32>
    %c0_13 = arith.constant 0 : index
    %c0_14 = arith.constant 0 : index
    %c0_15 = arith.constant 0 : index
    %26 = vector.load %arg6[%c0_13, %c0_14, %c0_15] : memref<1x8x16xf32, #tpu.memory_space<vmem>>, vector<1x8x16xf32>
    %27 = vector.shape_cast %26 : vector<1x8x16xf32> to vector<8x16xf32>
    %28 = vector.shape_cast %22 : vector<8x16xf32> to vector<1x8x16xf32>
    tpu.vector_store %arg6[%c0_13, %c0_14, %c0_15], %28 {strides = array<i32>} : memref<1x8x16xf32, #tpu.memory_space<vmem>>, vector<1x8x16xf32>,
    %cst_16 = arith.constant 2.000000e+00 : f32
    %29 = vector.broadcast %cst_16 : f32 to vector<1x16xf32>
    %30 = arith.mulf %29, %10 : vector<1x16xf32>
    %31 = arith.subf %25, %30 : vector<1x16xf32>
    %cst_17 = arith.constant 0.000000e+00 : f32
    %32 = vector.broadcast %cst_17 : f32 to vector<1x16xf32>
    %33 = arith.maximumf %31, %32 : vector<1x16xf32>
    %c0_18 = arith.constant 0 : index
    %c0_19 = arith.constant 0 : index
    %c0_20 = arith.constant 0 : index
    %34 = vector.load %arg7[%c0_18, %c0_19, %c0_20] : memref<1x1x16xf32, #tpu.memory_space<vmem>>, vector<1x1x16xf32>
    %35 = vector.shape_cast %34 : vector<1x1x16xf32> to vector<1x16xf32>
    %36 = vector.shape_cast %33 : vector<1x16xf32> to vector<1x1x16xf32>
    tpu.vector_store %arg7[%c0_18, %c0_19, %c0_20], %36 {strides = array<i32>} : memref<1x1x16xf32, #tpu.memory_space<vmem>>, vector<1x1x16xf32>,
    %c0_21 = arith.constant 0 : index
    %c0_22 = arith.constant 0 : index
    %c0_23 = arith.constant 0 : index
    %37 = vector.load %arg8[%c0_21, %c0_22, %c0_23] : memref<1x1x16xi32, #tpu.memory_space<vmem>>, vector<1x1x16xi32>
    %38 = vector.shape_cast %37 : vector<1x1x16xi32> to vector<1x16xi32>
    %39 = vector.shape_cast %17 : vector<1x16xi32> to vector<1x1x16xi32>
    tpu.vector_store %arg8[%c0_21, %c0_22, %c0_23], %39 {strides = array<i32>} : memref<1x1x16xi32, #tpu.memory_space<vmem>>, vector<1x1x16xi32>,
    return
  }
  func.func @transform_0(%arg0: i32, %arg1: i32) -> (i32, i32, i32) {
    %c0_i32 = arith.constant 0 : i32
    %c0_i32_0 = arith.constant 0 : i32
    return %arg0, %c0_i32, %arg1 : i32, i32, i32
  }
  func.func @transform_1(%arg0: i32, %arg1: i32) -> (i32, i32) {
    %c0_i32 = arith.constant 0 : i32
    %c0_i32_0 = arith.constant 0 : i32
    %c0_i32_1 = arith.constant 0 : i32
    return %c0_i32, %c0_i32_0 : i32, i32
  }
  func.func @transform_2(%arg0: i32, %arg1: i32) -> (i32, i32) {
    %c0_i32 = arith.constant 0 : i32
    %c0_i32_0 = arith.constant 0 : i32
    %c0_i32_1 = arith.constant 0 : i32
    return %c0_i32, %c0_i32_0 : i32, i32
  }
  func.func @transform_3(%arg0: i32, %arg1: i32) -> (i32, i32) {
    %c0_i32 = arith.constant 0 : i32
    %c0_i32_0 = arith.constant 0 : i32
    %c0_i32_1 = arith.constant 0 : i32
    return %c0_i32, %c0_i32_0 : i32, i32
  }
  func.func @transform_4(%arg0: i32, %arg1: i32) -> (i32, i32, i32) {
    %c0_i32 = arith.constant 0 : i32
    %c0_i32_0 = arith.constant 0 : i32
    return %arg0, %c0_i32, %arg1 : i32, i32, i32
  }
  func.func @transform_5(%arg0: i32, %arg1: i32) -> (i32, i32, i32) {
    %c0_i32 = arith.constant 0 : i32
    %c0_i32_0 = arith.constant 0 : i32
    return %arg0, %c0_i32, %arg1 : i32, i32, i32
  }
  func.func @transform_6(%arg0: i32, %arg1: i32) -> (i32, i32, i32) {
    %c0_i32 = arith.constant 0 : i32
    %c0_i32_0 = arith.constant 0 : i32
    return %arg0, %c0_i32, %arg1 : i32, i32, i32
  }
}

</mosaic_0001>

<bundles_post_ra>
// kernel: tpu_custom_call.1
= control target key start
LH: loop header
LB: loop body
LE: loop exit
PB: predicated region body
PF: predicated region fallthrough
CT: control target
= control target key end

     0   :  { %s1094_s0 = inlined_call_operand.vmem [shape: f32[2,4,16], index: 0, kind: input, shape index: {}]   ;;  %s1095_s1 = inlined_call_operand.vmem [shape: f32[8,4], index: 1, kind: input, shape index: {}]   ;;  %s1096_s2 = inlined_call_operand.vmem [shape: f32[16,8], index: 2, kind: input, shape index: {}]   ;;  %s1097_s3 = inlined_call_operand.vmem [shape: f32[16,1], index: 3, kind: input, shape index: {}]   ;;  %s1098_s4 = inlined_call_operand.hbm [shape: f32[2,8,16], index: 4, kind: output, shape index: {0}]   ;;  %s1099_s5 = inlined_call_operand.hbm [shape: f32[2,1,16], index: 5, kind: output, shape index: {1}]   ;;  %s1100_s6 = inlined_call_operand.hbm [shape: s32[2,1,16], index: 6, kind: output, shape index: {2}]  }
   0x1   :  { %1104 = sst [smem:[#allocation9_spill]] %s1094_s0 }
   0x2   :  { %12 = vsyncpa [#allocation3], 0 }
   0x3   :  { %14 = vsyncpa [#allocation3 + $0x1], 0 }
   0x4   :  { %15 = vsyncpa [#allocation5], 0 }
   0x5   :  { %17 = vsyncpa [#allocation5 + $0x1], 0  ;;  %s920_s21 = smov 0   ;;  %s922_s22 = smov 0  }
   0x6   :  { %s924_s23 = smov 0   ;;  %s926_s24 = smov 0  }
   0x7   :  { %s928_s25 = smov 0   ;;  %s930_s26 = smov 0  }
   0x8 LB: > { %s653_s27 = sadd.s32 4294967295, %s881_s26   ;;  %s1101_s28 = sadd.s32 4294967294, %s881_s26   ;;  %s881_s26 = sphi %s930_s26, %s23_s26   ;;  %s877_s25 = sphi %s928_s25, %s1115_s25   ;;  %s873_s24 = sphi %s926_s24, %s1114_s24   ;;  %s869_s23 = sphi %s924_s23, %s1113_s23   ;;  %s865_s22 = sphi %s922_s22, %s1112_s22   ;;  %s861_s21 = sphi %s920_s21, %s1111_s21  }
   0x9   : > { %s35_s29 = sadd.s32 1, %s877_s25  ;;  %s135_s30 = sadd.s32 1, %s869_s23 }
   0xa   : > { %p37_p0 = scmp.ge.s32.totalorder %s35_s29, 2  ;;  %p145_p1 = scmp.ne.s32.totalorder %s869_s23, %s865_s22 }
   0xb   : > { %p146_p2 = scmp.eq.s32.totalorder %s653_s27, 1  ;;  %p151_p3 = scmp.ne.s32.totalorder %s865_s22, %s861_s21 }
   0xc   : > { %s1117_s29 = smov (%p37_p0, %s35_s29), 0  ;;  %p152_p5 = scmp.eq.s32.totalorder %s1101_s28, 1 }
   0xd   : > { %p962_p4 = por %p146_p2, %p145_p1  ;;  %s130_s8 = ssub.s32 %s877_s25, %s1117_s29 }
   0xe   : > { %p657_p6 = scmp.ge.s32.totalorder %s881_s26, 1  ;;  %p133_p7 = scmp.eq.s32.totalorder %s130_s8, 0 }
   0xf   : > { %p971_p8 = por %p152_p5, %p151_p3  ;;  %p245_p9 = scmp.lt.s32.totalorder %s881_s26, 3 }
  0x10   : > { %s977_s10 = scalar_select %p133_p7, %s869_s23, %s135_s30  }
  0x11   : > { %p246_p10 = pnand %p657_p6, %p245_p9 }
  0x12   : > { %p285_p11 = scmp.lt.s32.totalorder (!%p246_p10), %s873_s24, 1  ;;  %s1107_s0 = sld [smem:[#allocation9_spill]] (!%p246_p10) }
  0x13   : > { %249 = sbr.rel (%p246_p10) target bundleno = 462 (0x1ce), region = 36  ;;  %s1003_s14 = sand.u32 (!%p246_p10), 1, %s865_s22  }
  0x14   : > { %s1102_s16 = scalar_lea.vmem (!%p246_p10), [#allocation6], %s1003_s14  ;;  %s508_s19 = scalar_lea.hbm (!%p246_p10), %s1099_s5, %s873_s24 }
  0x15   : > { %s1020_s20 = sand.u32 (!%p246_p10), 1, %s653_s27   ;;  %s512_s8 = sshll.u32 (!%p246_p10), %s508_s19, 4  ;;  %s513_s8 = int_to_ptr.hbm [resolvable:$true] %s512_s8 }
  0x16   : > { %s763_s17 = scalar_lea.hbm (!%p246_p10), %s1099_s5, 2 }
  0x18   : > { %s286_s11 = scalar_select %p285_p11, %s873_s24, 1  ;;  %vm302_vm0 = vcmask 1043456   ;;  %v293_v0 = vld [vmem:[%s1095_s1] sm:$0xff]  ;;  %vm298_vm1 = vcmask 31744   ;;  %v883_v3 = vmov 0   ;;  %v295_v5 = vld [vmem:[%s1096_s2 + $0x8] sm:$0xff]  ;;  %v378_v23 = vlaneseq }
  0x19   : > { %v294_v2 = vld [vmem:[%s1096_s2] sm:$0xff]  ;;  %742 = vset.pattern.permute.xlu0 %v883_v3  ;;  %v297_v6 = vld [vmem:[%s1097_s3 + $0x8] sm:$0xff]  ;;  %vm326_vm2 = vcmask 64512   ;;  %vm368_vm3 = vcmask 130048   ;;  %vm471_vm7 = vcmask 122880   ;;  %v884_v48 = vmov 1.0  }
  0x1a   : > { %s659_s12 = sshll.u32 %s286_s11, 2  ;;  %v296_v4 = vld [vmem:[%s1097_s3] sm:$0xff]  ;;  %404 = vxpose.xlu1.b32.start [1/2] (short) (narrow) %v294_v2, 8  ;;  %v379_v27 = vshrl.u32 %v378_v23, 7  ;;  %s1103_s11 = scalar_lea.sflag [#allocation5], %s1020_s20 }
  0x1b   : > { %s291_s15 = scalar_lea.vmem %s1107_s0, %s659_s12  ;;  %358 = vperm.xlu0 %742, %v296_v4   ;;  %s757_s12 = sshra.s32 %s513_s8, 4  ;;  %s758_s12 = int_to_ptr.hbm [resolvable:$true] %s757_s12 }
  0x1c   : > { %v292_v1 = vld [vmem:[%s291_s15] sm:$0xf]  ;;  %v380_v31 = vadd.s32 8, %v379_v27  ;;  %s278_s15 = scalar_lea.vmem [#allocation4], %s1003_s14  ;;  %s759_s13 = scalar_lea.hbm %s758_s12, 1 }
  0x1d   : > { %660 = vmatpush.msk.msra.mxu0 %vm302_vm0, %v292_v1  ;;  %s510_s30 = sshll.u32 %s278_s15, 4  ;;  %p760_p12 = scmp.ne.s32.totalorder %s758_s12, %s759_s13  ;;  %s511_s30 = int_to_ptr.vmem [resolvable:$true] %s510_s30 }
  0x1e   : > { %661 = vmatmul.msk.f32.vlgmr.msra.gmra.mxu0 %vm298_vm1, %v293_v0  ;;  %p764_p1 = scmp.lt.s32.totalorder %s758_s12, %s1099_s5  ;;  %p765_p2 = scmp.lt.s32.totalorder %s763_s17, %s759_s13 }
  0x1f   : > { %p761_p13 = pnand %p760_p12, %p962_p4 }
  0x20   : > { %p766_p3 = por %p765_p2, %p764_p1 }
  0x21   : > { %p762_p0 = pneg %p761_p13 }
  0x22   : > { %405 = vxpose.xlu1.b32.end [2/2] (short) (narrow) %v295_v5, 8 }
  0x23   : > { %363 = vperm.xlu0 %742, %v297_v6   ;;  %p767_p5 = pnand %p766_p3, %p762_p0 }
  0x8d   : > { %v359_v8 = vpop.permute.xlu0 %358 }
  0x95   : > { %v364_v14 = vpop.permute.xlu0 %363 }
  0x9b   : > { %v323_v7 = vpop.f32.mrf.mxu0 }
  0x9c   : > { %348 = vmatpush.msra.mxu1 %v323_v7  ;;  %673 = vmatpush.msra.mxu3 %v323_v7  ;;  %v459_v9 = vmul.f32 %v323_v7, %v323_v7 }
  0x9d   : > { %662 = vmatmul.msk.f32.vlgmr.msra.gmra.mxu1 %vm326_vm2, %v294_v2  ;;  %663 = vmatmul.msk.f32.vlgmr.msra.gmra.mxu3 %vm326_vm2, %v295_v5 }
  0x9e   : > { %v460_v10 = vsel %vm368_vm3, %v459_v9, 0.0 }
  0x9f   : > { %v461_v12 = vrot.slane %v460_v10, 4 }
  0xa1   : > { %v462_v17 = vadd.f32 %v461_v12, %v460_v10 }
  0xa3   : > { %v463_v21 = vrot.slane %v462_v17, 2 }
  0xa5   : > { %v464_v25 = vadd.f32 %v463_v21, %v462_v17 }
  0xa7   : > { %v465_v29 = vrot.slane %v464_v25, 1 }
  0xa9   : > { %v466_v33 = vadd.f32 %v465_v29, %v464_v25 }
  0xbe   : > { %v420_v49 = vpop.trf.xlu1 }
 0x11a   : > { %v350_v11 = vpop.f32.mrf.mxu1 }
 0x11b   : > { %v366_v13 = vsub.f32 %v350_v11, %v359_v8 }
 0x11d   : > { %v369_v18 = vsel %vm368_vm3, %v366_v13, -inf }
 0x120   : > { %v353_v15 = vpop.f32.mrf.mxu3 }
 0x121   : > { %v367_v16 = vsub.f32 %v353_v15, %v364_v14 }
 0x123   : > { %v370_v19 = vsel %vm368_vm3, %v367_v16, -inf }
 0x124   : > { %v371_v20 = vmax.f32 %v369_v18, %v370_v19 }
 0x126   : > { %v372_v22 = vrot.slane %v371_v20, 4 }
 0x128   : > { %v373_v24 = vmax.f32 %v371_v20, %v372_v22 }
 0x12a   : > { %v374_v26 = vrot.slane %v373_v24, 2 }
 0x12c   : > { %v375_v28 = vmax.f32 %v373_v24, %v374_v26 }
 0x12e   : > { %v376_v30 = vrot.slane %v375_v28, 1 }
 0x130   : > { %v377_v32 = vmax.f32 %v375_v28, %v376_v30 }
 0x132   : > { %vm382_vm4 = vcmp.ge.f32.partialorder %v367_v16, %v377_v32  ;;  %vm381_vm5 = vcmp.ge.f32.partialorder %v366_v13, %v377_v32  ;;  %v468_v34 = vmul.f32 2.0, %v377_v32 }
 0x133   : > { %v383_v35 = vsel %vm381_vm5, %v379_v27, 16  ;;  %v384_v36 = vsel %vm382_vm4, %v380_v31, 16 }
 0x134   : > { %v385_v37 = vsel %vm368_vm3, %v383_v35, 2147483647  ;;  %v386_v38 = vsel %vm368_vm3, %v384_v36, 2147483647  ;;  %v469_v39 = vsub.f32 %v466_v33, %v468_v34 }
 0x135   : > { %vm387_vm6 = vcmp.lt.s32.totalorder %v385_v37, %v386_v38 }
 0x136   : > { %v388_v40 = vsel %vm387_vm6, %v385_v37, %v386_v38  ;;  %v470_v41 = vmax.f32 %v469_v39, 0.0 }
 0x137   : > { %v389_v42 = vrot.slane %v388_v40, 4 }
 0x138   : > { %472 = vst.msk [vmem:[%s278_s15] sm:$0x1] %vm471_vm7, %v470_v41 }
 0x139   : > { %vm390_vm8 = vcmp.lt.s32.totalorder %v388_v40, %v389_v42 }
 0x13a   : > { %v391_v43 = vsel %vm390_vm8, %v388_v40, %v389_v42 }
 0x13b   : > { %v392_v44 = vrot.slane %v391_v43, 2 }
 0x13d   : > { %vm393_vm9 = vcmp.lt.s32.totalorder %v391_v43, %v392_v44 }
 0x13e   : > { %v394_v45 = vsel %vm393_vm9, %v391_v43, %v392_v44 }
 0x13f   : > { %v395_v46 = vrot.slane %v394_v45, 1 }
 0x141   : > { %vm396_vm10 = vcmp.lt.s32.totalorder %v394_v45, %v395_v46 }
 0x142   : > { %v397_v47 = vsel %vm396_vm10, %v394_v45, %v395_v46 }
 0x143   : > { %vm399_vm11 = vcmp.eq.s32.totalorder %v380_v31, %v397_v47  ;;  %473 = vst.msk [vmem:[%s1102_s16] sm:$0x1] %vm471_vm7, %v397_v47  ;;  %vm398_vm12 = vcmp.eq.s32.totalorder %v379_v27, %v397_v47 }
 0x144   : > { %666 = vmatpush.msk.msra.mxu2 %vm399_vm11, %v884_v48 }
 0x146   : > { %667 = vmatpush.msk.msra.mxu2 %vm398_vm12, %v884_v48 }
 0x147   : > { %668 = vmatmul.msk.f32.vlgmr.msra.gmra.mxu2 %vm368_vm3, %v420_v49 }
 0x148   : > { %770 = shalt.err (!%p767_p5)
}
 0x149   : > { %675 = dma.vmem_to_hbm [thread:$0]  (%p962_p4), %s511_s30, 16, %s513_s8, %s1103_s11  }
 0x14a   : > { %s522_s28 = scalar_lea.hbm %s1100_s6, %s873_s24  ;;  %s1108_s16 = scalar_lea.vmem [#allocation6], %s1003_s14 }
 0x14b   : > { %s524_s0 = sshll.u32 %s1108_s16, 4  ;;  %s526_s12 = sshll.u32 %s522_s28, 4  ;;  %s525_s0 = int_to_ptr.vmem [resolvable:$true] %s524_s0  ;;  %s527_s12 = int_to_ptr.hbm [resolvable:$true] %s526_s12 }
 0x14c   : > { %s785_s13 = sshra.s32 %s527_s12, 4  ;;  %s791_s30 = scalar_lea.hbm %s1100_s6, 2  ;;  %s786_s13 = int_to_ptr.hbm [resolvable:$true] %s785_s13 }
 0x14d   : > { %s787_s17 = scalar_lea.hbm %s786_s13, 1  ;;  %p792_p10 = scmp.lt.s32.totalorder %s786_s13, %s1100_s6 }
 0x14e   : > { %p788_p6 = scmp.ne.s32.totalorder %s786_s13, %s787_s17  ;;  %p793_p11 = scmp.lt.s32.totalorder %s791_s30, %s787_s17 }
 0x150   : > { %p789_p7 = pnand %p788_p6, %p962_p4  ;;  %p794_p12 = por %p793_p11, %p792_p10 }
 0x152   : > { %p790_p9 = pneg %p789_p7 }
 0x154   : > { %p795_p13 = pnand %p794_p12, %p790_p9 }
 0x156   : > { %798 = shalt.err (!%p795_p13)
}
 0x157   : > { %s1109_s15 = scalar_lea.sflag [#allocation5], %s1020_s20  ;;  %s658_s19 = sshll.u32 %s1003_s14, 3 }
 0x158   : > { %676 = dma.vmem_to_hbm [thread:$0]  (%p962_p4), %s525_s0, 16, %s527_s12, %s1109_s15  }
 0x159   : > { %s670_s28 = sshll.u32 %s873_s24, 3  ;;  %s272_s13 = scalar_lea.vmem [#allocation2], %s658_s19 }
 0x15a   : > { %s494_s11 = scalar_lea.hbm %s1098_s4, %s670_s28  ;;  %s496_s17 = sshll.u32 %s272_s13, 4  ;;  %s497_s17 = int_to_ptr.vmem [resolvable:$true] %s496_s17 }
 0x15b   : > { %s498_s27 = sshll.u32 %s494_s11, 4  ;;  %s475_s20 = scalar_lea.sflag [#allocation3], %s1003_s14  ;;  %s499_s27 = int_to_ptr.hbm [resolvable:$true] %s498_s27 }
 0x15c   : > { %s813_s30 = sshra.s32 %s499_s27, 4  ;;  %s819_s12 = scalar_lea.hbm %s1098_s4, 16  ;;  %s814_s30 = int_to_ptr.hbm [resolvable:$true] %s813_s30 }
 0x15d   : > { %s815_s8 = scalar_lea.hbm %s814_s30, 8  ;;  %p820_p3 = scmp.lt.s32.totalorder %s814_s30, %s1098_s4 }
 0x15e   : > { %p816_p0 = scmp.ne.s32.totalorder %s814_s30, %s815_s8  ;;  %p821_p5 = scmp.lt.s32.totalorder %s819_s12, %s815_s8 }
 0x160   : > { %p817_p1 = pnand %p816_p0, %p962_p4  ;;  %p822_p6 = por %p821_p5, %p820_p3 }
 0x162   : > { %p818_p2 = pneg %p817_p1 }
 0x164   : > { %p823_p7 = pnand %p822_p6, %p818_p2 }
 0x1ca   : > { %v456_v50 = vpop.f32.mrf.mxu2 }
 0x1cb   : > { %467 = vst.msk [vmem:[%s272_s13] sm:$0xff] %vm368_vm3, %v456_v50 }
 0x1cc   : > { %826 = shalt.err (!%p823_p7)
}
 0x1cd   : > { %674 = dma.vmem_to_hbm [thread:$0]  (%p962_p4), %s497_s17, 128, %s499_s27, %s475_s20  }
 0x1ce PF: > { %p690_p9 = scmp.ge.s32.totalorder %s881_s26, 2  ;;  %s538_s14 = sand.u32 1, %s861_s21  }
 0x1cf   : > { %s539_s28 = scalar_lea.sflag [#allocation3], %s538_s14 }
 0x1d0   : > { %p681_p10 = pnand %p690_p9, %p971_p8 }
 0x1d2   : > { %p682_p11 = pneg %p681_p10 }
 0x1d4   : > { %852 = dma.done.wait (%p682_p11), %s539_s28, 128  }
 0x1d5   : > { %854 = vsyncadd (%p682_p11), %s539_s28, 4294967168  ;;  %s1110_s16 = sadd.s32 4294967294, %s881_s26  }
 0x1d6   : > { %s548_s18 = sand.u32 1, %s1110_s16  }
 0x1d7   : > { %s549_s11 = scalar_lea.sflag [#allocation5], %s548_s18 }
 0x1d8   : > { %856 = dma.done.wait (%p682_p11), %s549_s11, 32  }
 0x1d9   : > { %858 = vsyncadd (%p682_p11), %s549_s11, 4294967264  ;;  %s23_s26 = sadd.s32 1, %s881_s26   ;;  %s1111_s21 = smov %s865_s22 }
 0x1da   : > { %p20_p4 = scmp.ge.s32.totalorder %s23_s26, 4   ;;  %s1112_s22 = smov %s869_s23 }
 0x1db   : > { %s1113_s23 = smov %s977_s10  ;;  %s1114_s24 = smov %s877_s25 }
 0x1dc   : > { %s1115_s25 = smov %s1117_s29  ;;  %22 = sbr.rel (!%p20_p4) target bundleno = 8 (0x8), region = 103 }
 0x1e1   :  { %563 = vsyncpa [#allocation3], 1 }
 0x1e2   :  { %565 = vsyncpa [#allocation3 + $0x1], 1 }
 0x1e3   :  { %566 = vsyncpa [#allocation5], 1 }
 0x1e4   :  { %568 = vsyncpa [#allocation5 + $0x1], 1 }

</bundles_post_ra>
